<compile_context>
chip_gen: v6e
topology: v6e:2x2x1
jax: 0.10.0
libtpu: 0.0.40
codegen_flags: <defaults>
</compile_context>

<pallas_src>
import functools

import jax
import jax.numpy as jnp
from jax.experimental import pallas as pl
from jax.experimental.pallas import tpu as pltpu

IN_DIM = 28 * 28   # 784
H1 = 128
H2 = 64


def _round_up(n, m):
    return ((n + m - 1) // m) * m


def _autoencoder_kernel(x_ref, w1_ref, b1_ref, w2_ref, b2_ref,
                        w3_ref, b3_ref, w4_ref, b4_ref, o_ref,
                        *, approx_sigmoid):
    cd = w1_ref.dtype
    # x stays f32 in HBM; cast to the matmul dtype in VMEM (no extra HBM pass).
    x = x_ref[...].astype(cd)
    # encoder
    h = jnp.dot(x, w1_ref[...], preferred_element_type=jnp.float32) + b1_ref[...]
    h = jnp.maximum(h, 0.0).astype(cd)
    h = jnp.dot(h, w2_ref[...], preferred_element_type=jnp.float32) + b2_ref[...]
    h = jnp.maximum(h, 0.0).astype(cd)
    # decoder
    h = jnp.dot(h, w3_ref[...], preferred_element_type=jnp.float32) + b3_ref[...]
    h = jnp.maximum(h, 0.0).astype(cd)
    z = jnp.dot(h, w4_ref[...], preferred_element_type=jnp.float32) + b4_ref[...]
    if approx_sigmoid:
        # exp on EUP; approx reciprocal (vrcp) also on EUP -> divide off the VPU.
        y = pl.reciprocal(1.0 + jnp.exp(-z), approx=True)
    else:
        y = jax.nn.sigmoid(z)   # exact module semantics for the f32 path
    o_ref[...] = y.astype(o_ref.dtype)


def prepare_params(params, compute_dtype=jnp.bfloat16):
    """Cast weights to the compute dtype ONCE (cache the result across calls).

    Biases stay f32: they are added to the f32 MXU accumulator in-kernel.
    """
    w1, b1, w2, b2, w3, b3, w4, b4 = params
    cd = compute_dtype
    f32 = jnp.float32
    return (w1.astype(cd), b1.astype(f32).reshape(1, -1),
            w2.astype(cd), b2.astype(f32).reshape(1, -1),
            w3.astype(cd), b3.astype(f32).reshape(1, -1),
            w4.astype(cd), b4.astype(f32).reshape(1, -1))


def _choose_batch_tile(B, requested, compute_dtype, out_dtype):
    # Sublane granularity: 8 rows for f32 output, 16 for 16-bit packed output.
    min_rows = 16 if jnp.dtype(out_dtype).itemsize == 2 else 8
    if requested is None:
        # bf16 matmuls are cleanly memory-bound -> larger tiles; cap f32 at 512
        # (v5e scoped-VMEM friendly, still ~85% of HBM roofline).
        requested = 1024 if jnp.dtype(compute_dtype).itemsize == 2 else 512
    tile = min(requested, _round_up(B, min_rows))
    # v7x has 2 TensorCores: keep >= 2 "parallel" grid steps for large batches.
    if B > 2 * 256:
        tile = min(tile, _round_up(pl.cdiv(B, 2), min_rows))
    return max(min_rows, _round_up(tile, min_rows))


def autoencoder(x, params, *, batch_tile=None, out_dtype=jnp.float32):
    """Forward pass. x: (B, 784) f32; params from `prepare_params`.

    Returns (B, 784) in `out_dtype` (pass jnp.bfloat16 to halve the largest
    HBM stream if downstream tolerates it).
    """
    w1, b1, w2, b2, w3, b3, w4, b4 = params
    B = x.shape[0]
    compute_dtype = w1.dtype

    tile = _choose_batch_tile(B, batch_tile, compute_dtype, out_dtype)
    grid = (pl.cdiv(B, tile),)   # partial last block: output rows masked on store

    approx_sigmoid = jnp.dtype(compute_dtype).itemsize < 4
    kernel = functools.partial(_autoencoder_kernel, approx_sigmoid=approx_sigmoid)

    def wspec(shape):
        # Grid-invariant block: HBM->VMEM copy issued once, reused every step.
        return pl.BlockSpec(shape, lambda i: (0, 0))

    flops = 2 * B * (IN_DIM * H1 + H1 * H2 + H2 * H1 + H1 * IN_DIM)
    bytes_accessed = (
        x.size * x.dtype.itemsize
        + B * IN_DIM * jnp.dtype(out_dtype).itemsize
        + sum(a.size * a.dtype.itemsize
              for a in (w1, b1, w2, b2, w3, b3, w4, b4)))
    cost = pl.CostEstimate(flops=flops, transcendentals=B * IN_DIM,
                           bytes_accessed=bytes_accessed)

    out = pl.pallas_call(
        kernel,
        out_shape=jax.ShapeDtypeStruct((B, IN_DIM), out_dtype),
        grid_spec=pltpu.PrefetchScalarGridSpec(
            num_scalar_prefetch=0,
            grid=grid,
            in_specs=[
                pl.BlockSpec((tile, IN_DIM), lambda i: (i, 0)),   # x
                wspec((IN_DIM, H1)), wspec((1, H1)),              # W1, b1
                wspec((H1, H2)),     wspec((1, H2)),              # W2, b2
                wspec((H2, H1)),     wspec((1, H1)),              # W3, b3
                wspec((H1, IN_DIM)), wspec((1, IN_DIM)),          # W4, b4
            ],
            out_specs=pl.BlockSpec((tile, IN_DIM), lambda i: (i, 0)),
        ),
        compiler_params=pltpu.CompilerParams(
            dimension_semantics=("parallel",),
            # 1024x784 f32 x/out double-buffered + f32 temps fit comfortably;
            # 48 MiB is within v5e/v6e (128 MiB) and v7x (64 MiB) physical VMEM.
            vmem_limit_bytes=48 * 1024 * 1024),
        cost_estimate=cost,
    )(x, w1, b1, w2, b2, w3, b3, w4, b4)
    return out


def init_params(key):
    # Mimics nn.Linear's uniform(-1/sqrt(fan_in), +1/sqrt(fan_in)) init.
    # Weights stored (in_features, out_features): y = x @ W + b  ==  x @ W_pt.T + b.
    def linear(k, fan_in, fan_out):
        kw, kb = jax.random.split(k)
        bound = 1.0 / jnp.sqrt(jnp.float32(fan_in))
        w = jax.random.uniform(kw, (fan_in, fan_out), jnp.float32, -bound, bound)
        b = jax.random.uniform(kb, (1, fan_out), jnp.float32, -bound, bound)
        return w, b

    k1, k2, k3, k4 = jax.random.split(key, 4)
    w1, b1 = linear(k1, IN_DIM, H1)
    w2, b2 = linear(k2, H1, H2)
    w3, b3 = linear(k3, H2, H1)
    w4, b4 = linear(k4, H1, IN_DIM)
    return (w1, b1, w2, b2, w3, b3, w4, b4)


def reference(x, params):
    w1, b1, w2, b2, w3, b3, w4, b4 = params
    h = jnp.maximum(x @ w1 + b1, 0.0)
    h = jnp.maximum(h @ w2 + b2, 0.0)
    h = jnp.maximum(h @ w3 + b3, 0.0)
    return jax.nn.sigmoid(h @ w4 + b4)


if __name__ == "__main__":
    key = jax.random.PRNGKey(0)
    k_param, k_x = jax.random.split(key)
    params = init_params(k_param)

    B = 16  # small batch; 784 feature dim is fixed by the module (28*28)
    x = jax.random.uniform(k_x, (B, IN_DIM), jnp.float32)
    ref = reference(x, params)

    # Exact f32 path (same semantics as the PyTorch module).
    p_f32 = prepare_params(params, jnp.float32)
    out = jax.block_until_ready(autoencoder(x, p_f32))
    assert out.shape == (B, IN_DIM) and out.dtype == jnp.float32
    assert jnp.allclose(out, ref, atol=2e-4, rtol=1e-4), "f32 mismatch vs reference"

    # Default bf16 matmul path (f32 accumulation + f32 epilogue, in-kernel x cast).
    p_bf16 = prepare_params(params, jnp.bfloat16)
    out_bf16 = jax.block_until_ready(autoencoder(x, p_bf16))
    assert jnp.allclose(out_bf16, ref, atol=5e-2, rtol=5e-2), "bf16 mismatch vs reference"

    # Ragged batch with multiple grid steps -> exercises the masked partial last block.
    B2 = 200
    x2 = jax.random.uniform(jax.random.PRNGKey(1), (B2, IN_DIM), jnp.float32)
    ref2 = reference(x2, params)
    out2 = jax.block_until_ready(autoencoder(x2, p_bf16, batch_tile=128))
    assert out2.shape == (B2, IN_DIM)
    assert jnp.allclose(out2, ref2, atol=5e-2, rtol=5e-2), "ragged bf16 mismatch"

    print("KERNEL_OK")
</pallas_src>

<mosaic_0001>
module attributes {stable_mosaic.version = 11 : i64} {
  func.func @_autoencoder_kernel(%arg0: i32, %arg1: memref<16x784xf32, #tpu.memory_space<vmem>>, %arg2: memref<784x128xf32, #tpu.memory_space<vmem>>, %arg3: memref<1x128xf32, #tpu.memory_space<vmem>>, %arg4: memref<128x64xf32, #tpu.memory_space<vmem>>, %arg5: memref<1x64xf32, #tpu.memory_space<vmem>>, %arg6: memref<64x128xf32, #tpu.memory_space<vmem>>, %arg7: memref<1x128xf32, #tpu.memory_space<vmem>>, %arg8: memref<128x784xf32, #tpu.memory_space<vmem>>, %arg9: memref<1x784xf32, #tpu.memory_space<vmem>>, %arg10: memref<16x784xf32, #tpu.memory_space<vmem>>) attributes {dimension_semantics = [#tpu.dimension_semantics<parallel>], iteration_bounds = array<i64: 1>, scalar_prefetch = 0 : i64, scratch_operands = 0 : i64, tpu.core_type = #tpu.core_type<tc>, window_params = [{transform_indices = @transform_0, window_bounds = array<i64: 16, 784>}, {pipeline_mode = #tpu.pipeline_mode<synchronous>, transform_indices = @transform_1, window_bounds = array<i64: 784, 128>}, {pipeline_mode = #tpu.pipeline_mode<synchronous>, transform_indices = @transform_2, window_bounds = array<i64: 1, 128>}, {pipeline_mode = #tpu.pipeline_mode<synchronous>, transform_indices = @transform_3, window_bounds = array<i64: 128, 64>}, {pipeline_mode = #tpu.pipeline_mode<synchronous>, transform_indices = @transform_4, window_bounds = array<i64: 1, 64>}, {pipeline_mode = #tpu.pipeline_mode<synchronous>, transform_indices = @transform_5, window_bounds = array<i64: 64, 128>}, {pipeline_mode = #tpu.pipeline_mode<synchronous>, transform_indices = @transform_6, window_bounds = array<i64: 1, 128>}, {pipeline_mode = #tpu.pipeline_mode<synchronous>, transform_indices = @transform_7, window_bounds = array<i64: 128, 784>}, {pipeline_mode = #tpu.pipeline_mode<synchronous>, transform_indices = @transform_8, window_bounds = array<i64: 1, 784>}, {transform_indices = @transform_9, window_bounds = array<i64: 16, 784>}]} {
    %c0 = arith.constant 0 : index
    %c0_0 = arith.constant 0 : index
    %0 = vector.load %arg1[%c0, %c0_0] : memref<16x784xf32, #tpu.memory_space<vmem>>, vector<16x784xf32>
    %c0_1 = arith.constant 0 : index
    %c0_2 = arith.constant 0 : index
    %1 = vector.load %arg2[%c0_1, %c0_2] : memref<784x128xf32, #tpu.memory_space<vmem>>, vector<784x128xf32>
    %cst = arith.constant dense<0.000000e+00> : vector<16x128xf32>
    %2 = tpu.matmul %0, %1, %cst {dimension_numbers = #tpu.dot_dimension_numbers<[1], [0], [0], [1], [0, 0, 1, 1], [], []>} : vector<16x784xf32>, vector<784x128xf32>, vector<16x128xf32> -> vector<16x128xf32>
    %c0_3 = arith.constant 0 : index
    %c0_4 = arith.constant 0 : index
    %3 = vector.load %arg3[%c0_3, %c0_4] : memref<1x128xf32, #tpu.memory_space<vmem>>, vector<1x128xf32>
    %4 = vector.broadcast %3 : vector<1x128xf32> to vector<16x128xf32>
    %5 = arith.addf %2, %4 : vector<16x128xf32>
    %cst_5 = arith.constant 0.000000e+00 : f32
    %6 = vector.broadcast %cst_5 : f32 to vector<16x128xf32>
    %7 = arith.maximumf %5, %6 : vector<16x128xf32>
    %c0_6 = arith.constant 0 : index
    %c0_7 = arith.constant 0 : index
    %8 = vector.load %arg4[%c0_6, %c0_7] : memref<128x64xf32, #tpu.memory_space<vmem>>, vector<128x64xf32>
    %cst_8 = arith.constant dense<0.000000e+00> : vector<16x64xf32>
    %9 = tpu.matmul %7, %8, %cst_8 {dimension_numbers = #tpu.dot_dimension_numbers<[1], [0], [0], [1], [0, 0, 1, 1], [], []>} : vector<16x128xf32>, vector<128x64xf32>, vector<16x64xf32> -> vector<16x64xf32>
    %c0_9 = arith.constant 0 : index
    %c0_10 = arith.constant 0 : index
    %10 = vector.load %arg5[%c0_9, %c0_10] : memref<1x64xf32, #tpu.memory_space<vmem>>, vector<1x64xf32>
    %11 = vector.broadcast %10 : vector<1x64xf32> to vector<16x64xf32>
    %12 = arith.addf %9, %11 : vector<16x64xf32>
    %cst_11 = arith.constant 0.000000e+00 : f32
    %13 = vector.broadcast %cst_11 : f32 to vector<16x64xf32>
    %14 = arith.maximumf %12, %13 : vector<16x64xf32>
    %c0_12 = arith.constant 0 : index
    %c0_13 = arith.constant 0 : index
    %15 = vector.load %arg6[%c0_12, %c0_13] : memref<64x128xf32, #tpu.memory_space<vmem>>, vector<64x128xf32>
    %cst_14 = arith.constant dense<0.000000e+00> : vector<16x128xf32>
    %16 = tpu.matmul %14, %15, %cst_14 {dimension_numbers = #tpu.dot_dimension_numbers<[1], [0], [0], [1], [0, 0, 1, 1], [], []>} : vector<16x64xf32>, vector<64x128xf32>, vector<16x128xf32> -> vector<16x128xf32>
    %c0_15 = arith.constant 0 : index
    %c0_16 = arith.constant 0 : index
    %17 = vector.load %arg7[%c0_15, %c0_16] : memref<1x128xf32, #tpu.memory_space<vmem>>, vector<1x128xf32>
    %18 = vector.broadcast %17 : vector<1x128xf32> to vector<16x128xf32>
    %19 = arith.addf %16, %18 : vector<16x128xf32>
    %cst_17 = arith.constant 0.000000e+00 : f32
    %20 = vector.broadcast %cst_17 : f32 to vector<16x128xf32>
    %21 = arith.maximumf %19, %20 : vector<16x128xf32>
    %c0_18 = arith.constant 0 : index
    %c0_19 = arith.constant 0 : index
    %22 = vector.load %arg8[%c0_18, %c0_19] : memref<128x784xf32, #tpu.memory_space<vmem>>, vector<128x784xf32>
    %cst_20 = arith.constant dense<0.000000e+00> : vector<16x784xf32>
    %23 = tpu.matmul %21, %22, %cst_20 {dimension_numbers = #tpu.dot_dimension_numbers<[1], [0], [0], [1], [0, 0, 1, 1], [], []>} : vector<16x128xf32>, vector<128x784xf32>, vector<16x784xf32> -> vector<16x784xf32>
    %c0_21 = arith.constant 0 : index
    %c0_22 = arith.constant 0 : index
    %24 = vector.load %arg9[%c0_21, %c0_22] : memref<1x784xf32, #tpu.memory_space<vmem>>, vector<1x784xf32>
    %25 = vector.broadcast %24 : vector<1x784xf32> to vector<16x784xf32>
    %26 = arith.addf %23, %25 : vector<16x784xf32>
    %27 = arith.negf %26 : vector<16x784xf32>
    %28 = math.exp %27 : vector<16x784xf32>
    %cst_23 = arith.constant 1.000000e+00 : f32
    %29 = vector.broadcast %cst_23 : f32 to vector<16x784xf32>
    %30 = arith.addf %29, %28 : vector<16x784xf32>
    %31 = arith.divf %29, %30 : vector<16x784xf32>
    %c0_24 = arith.constant 0 : index
    %c0_25 = arith.constant 0 : index
    %32 = vector.load %arg10[%c0_24, %c0_25] : memref<16x784xf32, #tpu.memory_space<vmem>>, vector<16x784xf32>
    tpu.vector_store %arg10[%c0_24, %c0_25], %31 {strides = array<i32>} : memref<16x784xf32, #tpu.memory_space<vmem>>, vector<16x784xf32>,
    return
  }
  func.func @transform_0(%arg0: i32) -> (i32, i32) {
    %c0_i32 = arith.constant 0 : i32
    %c0_i32_0 = arith.constant 0 : i32
    return %arg0, %c0_i32 : i32, i32
  }
  func.func @transform_1(%arg0: i32) -> (i32, i32) {
    %c0_i32 = arith.constant 0 : i32
    %c0_i32_0 = arith.constant 0 : i32
    %c0_i32_1 = arith.constant 0 : i32
    return %c0_i32, %c0_i32_0 : i32, i32
  }
  func.func @transform_2(%arg0: i32) -> (i32, i32) {
    %c0_i32 = arith.constant 0 : i32
    %c0_i32_0 = arith.constant 0 : i32
    %c0_i32_1 = arith.constant 0 : i32
    return %c0_i32, %c0_i32_0 : i32, i32
  }
  func.func @transform_3(%arg0: i32) -> (i32, i32) {
    %c0_i32 = arith.constant 0 : i32
    %c0_i32_0 = arith.constant 0 : i32
    %c0_i32_1 = arith.constant 0 : i32
    return %c0_i32, %c0_i32_0 : i32, i32
  }
  func.func @transform_4(%arg0: i32) -> (i32, i32) {
    %c0_i32 = arith.constant 0 : i32
    %c0_i32_0 = arith.constant 0 : i32
    %c0_i32_1 = arith.constant 0 : i32
    return %c0_i32, %c0_i32_0 : i32, i32
  }
  func.func @transform_5(%arg0: i32) -> (i32, i32) {
    %c0_i32 = arith.constant 0 : i32
    %c0_i32_0 = arith.constant 0 : i32
    %c0_i32_1 = arith.constant 0 : i32
    return %c0_i32, %c0_i32_0 : i32, i32
  }
  func.func @transform_6(%arg0: i32) -> (i32, i32) {
    %c0_i32 = arith.constant 0 : i32
    %c0_i32_0 = arith.constant 0 : i32
    %c0_i32_1 = arith.constant 0 : i32
    return %c0_i32, %c0_i32_0 : i32, i32
  }
  func.func @transform_7(%arg0: i32) -> (i32, i32) {
    %c0_i32 = arith.constant 0 : i32
    %c0_i32_0 = arith.constant 0 : i32
    %c0_i32_1 = arith.constant 0 : i32
    return %c0_i32, %c0_i32_0 : i32, i32
  }
  func.func @transform_8(%arg0: i32) -> (i32, i32) {
    %c0_i32 = arith.constant 0 : i32
    %c0_i32_0 = arith.constant 0 : i32
    %c0_i32_1 = arith.constant 0 : i32
    return %c0_i32, %c0_i32_0 : i32, i32
  }
  func.func @transform_9(%arg0: i32) -> (i32, i32) {
    %c0_i32 = arith.constant 0 : i32
    %c0_i32_0 = arith.constant 0 : i32
    return %arg0, %c0_i32 : i32, i32
  }
}

</mosaic_0001>

<bundles_post_ra>
// kernel: tpu_custom_call.1
= control target key start
LH: loop header
LB: loop body
LE: loop exit
PB: predicated region body
PF: predicated region fallthrough
CT: control target
= control target key end

     0   :  { %s2445_s0 = inlined_call_operand.vmem [shape: f32[16,784], index: 0, kind: input, shape index: {}]   ;;  %s2446_s1 = inlined_call_operand.vmem [shape: f32[784,128], index: 1, kind: input, shape index: {}]   ;;  %s2447_s2 = inlined_call_operand.vmem [shape: f32[1,128], index: 2, kind: input, shape index: {}]   ;;  %s2448_s3 = inlined_call_operand.vmem [shape: f32[128,64], index: 3, kind: input, shape index: {}]   ;;  %s2449_s4 = inlined_call_operand.vmem [shape: f32[1,64], index: 4, kind: input, shape index: {}]   ;;  %s2450_s5 = inlined_call_operand.vmem [shape: f32[64,128], index: 5, kind: input, shape index: {}]   ;;  %s2451_s6 = inlined_call_operand.vmem [shape: f32[1,128], index: 6, kind: input, shape index: {}]   ;;  %s2452_s7 = inlined_call_operand.vmem [shape: f32[128,784], index: 7, kind: input, shape index: {}]   ;;  %s2453_s8 = inlined_call_operand.vmem [shape: f32[1,784], index: 8, kind: input, shape index: {}]   ;;  %s2454_s9 = inlined_call_operand.hbm [shape: f32[16,784], index: 9, kind: output, shape index: {}]  }
   0x1   :  { %v78_v0 = vld [vmem:[%s2446_s1 + $0xf8] sm:$0xff]  ;;  %v77_v2 = vld [vmem:[%s2446_s1 + $0xf0] sm:$0xff]  ;;  %v76_v6 = vld [vmem:[%s2446_s1 + $0xe8] sm:$0xff] }
   0x2   :  { %v62_v1 = vld [vmem:[%s2446_s1 + $0x78] sm:$0xff]  ;;  %1250 = vmatprep.subr.mxu0 %v78_v0  ;;  %v61_v4 = vld [vmem:[%s2446_s1 + $0x70] sm:$0xff]  ;;  %v60_v8 = vld [vmem:[%s2446_s1 + $0x68] sm:$0xff] }
   0x3   :  { %v110_v3 = vld [vmem:[%s2446_s1 + $0x1f8] sm:$0xff]  ;;  %1251 = vmatpush3.msra.mxu0 %v62_v1  ;;  %v109_v7 = vld [vmem:[%s2446_s1 + $0x1f0] sm:$0xff]  ;;  %v108_v10 = vld [vmem:[%s2446_s1 + $0x1e8] sm:$0xff] }
   0x4   :  { %v94_v5 = vld [vmem:[%s2446_s1 + $0x178] sm:$0xff]  ;;  %1288 = vmatprep.subr.mxu1 %v110_v3  ;;  %1252 = vmatprep.subr.mxu0 %v77_v2  ;;  %v93_v9 = vld [vmem:[%s2446_s1 + $0x170] sm:$0xff]  ;;  %v75_v11 = vld [vmem:[%s2446_s1 + $0xe0] sm:$0xff] }
   0x5   :  { %1289 = vmatpush3.msra.mxu1 %v94_v5  ;;  %1253 = vmatpush3.msra.mxu0 %v61_v4  ;;  %v92_v12 = vld [vmem:[%s2446_s1 + $0x168] sm:$0xff]  ;;  %v59_v13 = vld [vmem:[%s2446_s1 + $0x60] sm:$0xff]  ;;  %v74_v15 = vld [vmem:[%s2446_s1 + $0xd8] sm:$0xff] }
   0x6   :  { %1290 = vmatprep.subr.mxu1 %v109_v7  ;;  %1254 = vmatprep.subr.mxu0 %v76_v6  ;;  %v107_v14 = vld [vmem:[%s2446_s1 + $0x1e0] sm:$0xff]  ;;  %v58_v17 = vld [vmem:[%s2446_s1 + $0x58] sm:$0xff]  ;;  %v73_v19 = vld [vmem:[%s2446_s1 + $0xd0] sm:$0xff] }
   0x7   :  { %1291 = vmatpush3.msra.mxu1 %v93_v9  ;;  %1255 = vmatpush3.msra.mxu0 %v60_v8  ;;  %v91_v16 = vld [vmem:[%s2446_s1 + $0x160] sm:$0xff]  ;;  %v106_v18 = vld [vmem:[%s2446_s1 + $0x1d8] sm:$0xff]  ;;  %v57_v21 = vld [vmem:[%s2446_s1 + $0x50] sm:$0xff] }
   0x8   :  { %1292 = vmatprep.subr.mxu1 %v108_v10  ;;  %1256 = vmatprep.subr.mxu0 %v75_v11  ;;  %v90_v20 = vld [vmem:[%s2446_s1 + $0x158] sm:$0xff]  ;;  %v105_v22 = vld [vmem:[%s2446_s1 + $0x1d0] sm:$0xff]  ;;  %v72_v23 = vld [vmem:[%s2446_s1 + $0xc8] sm:$0xff] }
   0x9   :  { %1293 = vmatpush3.msra.mxu1 %v92_v12  ;;  %1257 = vmatpush3.msra.mxu0 %v59_v13  ;;  %v89_v24 = vld [vmem:[%s2446_s1 + $0x150] sm:$0xff]  ;;  %v56_v25 = vld [vmem:[%s2446_s1 + $0x48] sm:$0xff]  ;;  %v71_v27 = vld [vmem:[%s2446_s1 + $0xc0] sm:$0xff] }
   0xa   :  { %1294 = vmatprep.subr.mxu1 %v107_v14  ;;  %1258 = vmatprep.subr.mxu0 %v74_v15  ;;  %v104_v26 = vld [vmem:[%s2446_s1 + $0x1c8] sm:$0xff]  ;;  %v55_v29 = vld [vmem:[%s2446_s1 + $0x40] sm:$0xff]  ;;  %v70_v31 = vld [vmem:[%s2446_s1 + $0xb8] sm:$0xff] }
   0xb   :  { %1295 = vmatpush3.msra.mxu1 %v91_v16  ;;  %1259 = vmatpush3.msra.mxu0 %v58_v17  ;;  %v88_v28 = vld [vmem:[%s2446_s1 + $0x148] sm:$0xff]  ;;  %v103_v30 = vld [vmem:[%s2446_s1 + $0x1c0] sm:$0xff]  ;;  %v54_v33 = vld [vmem:[%s2446_s1 + $0x38] sm:$0xff] }
   0xc   :  { %1296 = vmatprep.subr.mxu1 %v106_v18  ;;  %1260 = vmatprep.subr.mxu0 %v73_v19  ;;  %v87_v32 = vld [vmem:[%s2446_s1 + $0x140] sm:$0xff]  ;;  %v102_v34 = vld [vmem:[%s2446_s1 + $0x1b8] sm:$0xff]  ;;  %v69_v35 = vld [vmem:[%s2446_s1 + $0xb0] sm:$0xff] }
   0xd   :  { %1297 = vmatpush3.msra.mxu1 %v90_v20  ;;  %1261 = vmatpush3.msra.mxu0 %v57_v21  ;;  %v86_v36 = vld [vmem:[%s2446_s1 + $0x138] sm:$0xff]  ;;  %v53_v37 = vld [vmem:[%s2446_s1 + $0x30] sm:$0xff]  ;;  %v68_v39 = vld [vmem:[%s2446_s1 + $0xa8] sm:$0xff] }
   0xe   :  { %1298 = vmatprep.subr.mxu1 %v105_v22  ;;  %1262 = vmatprep.subr.mxu0 %v72_v23  ;;  %v101_v38 = vld [vmem:[%s2446_s1 + $0x1b0] sm:$0xff]  ;;  %v52_v41 = vld [vmem:[%s2446_s1 + $0x28] sm:$0xff]  ;;  %v67_v43 = vld [vmem:[%s2446_s1 + $0xa0] sm:$0xff] }
   0xf   :  { %1299 = vmatpush3.msra.mxu1 %v89_v24  ;;  %1263 = vmatpush3.msra.mxu0 %v56_v25  ;;  %v85_v40 = vld [vmem:[%s2446_s1 + $0x130] sm:$0xff]  ;;  %v100_v42 = vld [vmem:[%s2446_s1 + $0x1a8] sm:$0xff]  ;;  %v51_v45 = vld [vmem:[%s2446_s1 + $0x20] sm:$0xff] }
  0x10   :  { %1300 = vmatprep.subr.mxu1 %v104_v26  ;;  %1264 = vmatprep.subr.mxu0 %v71_v27  ;;  %v84_v44 = vld [vmem:[%s2446_s1 + $0x128] sm:$0xff]  ;;  %v99_v46 = vld [vmem:[%s2446_s1 + $0x1a0] sm:$0xff]  ;;  %v66_v47 = vld [vmem:[%s2446_s1 + $0x98] sm:$0xff] }
  0x11   :  { %1301 = vmatpush3.msra.mxu1 %v88_v28  ;;  %1265 = vmatpush3.msra.mxu0 %v55_v29  ;;  %v83_v48 = vld [vmem:[%s2446_s1 + $0x120] sm:$0xff]  ;;  %v50_v49 = vld [vmem:[%s2446_s1 + $0x18] sm:$0xff]  ;;  %v65_v51 = vld [vmem:[%s2446_s1 + $0x90] sm:$0xff] }
  0x12   :  { %1302 = vmatprep.subr.mxu1 %v103_v30  ;;  %1266 = vmatprep.subr.mxu0 %v70_v31  ;;  %v98_v50 = vld [vmem:[%s2446_s1 + $0x198] sm:$0xff]  ;;  %v49_v53 = vld [vmem:[%s2446_s1 + $0x10] sm:$0xff]  ;;  %v64_v55 = vld [vmem:[%s2446_s1 + $0x88] sm:$0xff] }
  0x13   :  { %1303 = vmatpush3.msra.mxu1 %v87_v32  ;;  %1267 = vmatpush3.msra.mxu0 %v54_v33  ;;  %v82_v52 = vld [vmem:[%s2446_s1 + $0x118] sm:$0xff]  ;;  %v97_v54 = vld [vmem:[%s2446_s1 + $0x190] sm:$0xff]  ;;  %v48_v57 = vld [vmem:[%s2446_s1 + $0x8] sm:$0xff] }
  0x14   :  { %1304 = vmatprep.subr.mxu1 %v102_v34  ;;  %1268 = vmatprep.subr.mxu0 %v69_v35  ;;  %v81_v56 = vld [vmem:[%s2446_s1 + $0x110] sm:$0xff]  ;;  %v96_v58 = vld [vmem:[%s2446_s1 + $0x188] sm:$0xff]  ;;  %v63_v59 = vld [vmem:[%s2446_s1 + $0x80] sm:$0xff] }
  0x15   :  { %1305 = vmatpush3.msra.mxu1 %v86_v36  ;;  %1269 = vmatpush3.msra.mxu0 %v53_v37  ;;  %v34_v60 = vld [vmem:[%s2445_s0 + $0x8] sm:$0xff]  ;;  %v47_v61 = vld [vmem:[%s2446_s1] sm:$0xff]  ;;  %v142_v1 = vld [vmem:[%s2446_s1 + $0x2f8] sm:$0xff] }
  0x16   :  { %1306 = vmatprep.subr.mxu1 %v101_v38  ;;  %1270 = vmatprep.subr.mxu0 %v68_v39  ;;  %v80_v62 = vld [vmem:[%s2446_s1 + $0x108] sm:$0xff]  ;;  %v33_v63 = vld [vmem:[%s2445_s0] sm:$0xff]  ;;  %v36_v3 = vld [vmem:[%s2445_s0 + $0x18] sm:$0xff] }
  0x17   :  { %1307 = vmatpush3.msra.mxu1 %v85_v40  ;;  %1271 = vmatpush3.msra.mxu0 %v52_v41  ;;  %v95_v0 = vld [vmem:[%s2446_s1 + $0x180] sm:$0xff]  ;;  %v126_v4 = vld [vmem:[%s2446_s1 + $0x278] sm:$0xff]  ;;  %v35_v5 = vld [vmem:[%s2445_s0 + $0x10] sm:$0xff] }
  0x18   :  { %1308 = vmatprep.subr.mxu1 %v100_v42  ;;  %1272 = vmatprep.subr.mxu0 %v67_v43  ;;  %v79_v2 = vld [vmem:[%s2446_s1 + $0x100] sm:$0xff]  ;;  %v141_v6 = vld [vmem:[%s2446_s1 + $0x2f0] sm:$0xff]  ;;  %v140_v9 = vld [vmem:[%s2446_s1 + $0x2e8] sm:$0xff] }
  0x19   :  { %1309 = vmatpush3.msra.mxu1 %v84_v44  ;;  %1273 = vmatpush3.msra.mxu0 %v51_v45  ;;  %v125_v7 = vld [vmem:[%s2446_s1 + $0x270] sm:$0xff]  ;;  %v41_v8 = vld [vmem:[%s2445_s0 + $0x40] sm:$0xff]  ;;  %v40_v10 = vld [vmem:[%s2445_s0 + $0x38] sm:$0xff] }
  0x1a   :  { %1310 = vmatprep.subr.mxu1 %v99_v46  ;;  %1274 = vmatprep.subr.mxu0 %v66_v47  ;;  %v124_v11 = vld [vmem:[%s2446_s1 + $0x268] sm:$0xff]  ;;  %v43_v12 = vld [vmem:[%s2445_s0 + $0x50] sm:$0xff]  ;;  %v139_v13 = vld [vmem:[%s2446_s1 + $0x2e0] sm:$0xff] }
  0x1b   :  { %1311 = vmatpush3.msra.mxu1 %v83_v48  ;;  %1275 = vmatpush3.msra.mxu0 %v50_v49  ;;  %v42_v14 = vld [vmem:[%s2445_s0 + $0x48] sm:$0xff] }
  0x1c   :  { %1312 = vmatprep.subr.mxu1 %v98_v50  ;;  %1276 = vmatprep.subr.mxu0 %v65_v51 }
  0x1d   :  { %1313 = vmatpush3.msra.mxu1 %v82_v52  ;;  %1277 = vmatpush3.msra.mxu0 %v49_v53 }
  0x1e   :  { %1314 = vmatprep.subr.mxu1 %v97_v54  ;;  %1278 = vmatprep.subr.mxu0 %v64_v55 }
  0x1f   :  { %1315 = vmatpush3.msra.mxu1 %v81_v56  ;;  %1279 = vmatpush3.msra.mxu0 %v48_v57 }
  0x20   :  { %1316 = vmatprep.subr.mxu1 %v96_v58  ;;  %1280 = vmatprep.subr.mxu0 %v63_v59 }
  0x21   :  { %223 = vmatprep.mubr.f32.mxu0 %v34_v60  ;;  %1281 = vmatpush3.msra.mxu0 %v47_v61 }
  0x22   :  { %1317 = vmatpush3.msra.mxu1 %v80_v62  ;;  %224 = vmatmul.mubr.f32.vlgmr.msra.gmra.mxu0 %v33_v63 }
  0x23   :  { %1318 = vmatprep.subr.mxu1 %v95_v0  ;;  %1326 = vmatprep.subr.mxu0 %v142_v1 }
  0x24   :  { %1319 = vmatpush3.msra.mxu1 %v79_v2  ;;  %298 = vmatprep.mubr.f32.mxu1 %v36_v3 }
  0x25   :  { %1327 = vmatpush3.msra.mxu0 %v126_v4  ;;  %299 = vmatmul.mubr.f32.vlgmr.msra.gmra.mxu1 %v35_v5 }
  0x26   :  { %1328 = vmatprep.subr.mxu0 %v141_v6  ;;  %228 = vmatprep.mubr.f32.mxu0 %v41_v8 }
  0x27   :  { %1329 = vmatpush3.msra.mxu0 %v125_v7 }
  0x28   :  { %14 = vsyncpa [#allocation3], 0  ;;  %1330 = vmatprep.subr.mxu0 %v140_v9  ;;  %v123_v15 = vld [vmem:[%s2446_s1 + $0x260] sm:$0xff]  ;;  %229 = vmatmul.mubr.f32.gmra.mxu0 %v40_v10  ;;  %v144_v16 = vld [vmem:[%s2446_s1 + $0x308] sm:$0xff]  ;;  %vm152_vm0 = vcmask 130048   ;;  %vm576_vm1 = vcmask 523264  }
  0x29   :  { %1331 = vmatpush3.msra.mxu0 %v124_v11  ;;  %v138_v17 = vld [vmem:[%s2446_s1 + $0x2d8] sm:$0xff]  ;;  %303 = vmatprep.mubr.f32.mxu1 %v43_v12  ;;  %v38_v18 = vld [vmem:[%s2445_s0 + $0x28] sm:$0xff]  ;;  %v137_v20 = vld [vmem:[%s2446_s1 + $0x2d0] sm:$0xff] }
  0x2a   :  { %1332 = vmatprep.subr.mxu0 %v139_v13  ;;  %v122_v19 = vld [vmem:[%s2446_s1 + $0x258] sm:$0xff]  ;;  %304 = vmatmul.mubr.f32.gmra.mxu1 %v42_v14  ;;  %v143_v21 = vld [vmem:[%s2446_s1 + $0x300] sm:$0xff]  ;;  %v121_v22 = vld [vmem:[%s2446_s1 + $0x250] sm:$0xff] }
  0x2b   :  { %1333 = vmatpush3.msra.mxu0 %v123_v15  ;;  %1414 = vmatprep.subr.mxu1 %v144_v16  ;;  %v136_v23 = vld [vmem:[%s2446_s1 + $0x2c8] sm:$0xff]  ;;  %v39_v24 = vld [vmem:[%s2445_s0 + $0x30] sm:$0xff]  ;;  %v135_v27 = vld [vmem:[%s2446_s1 + $0x2c0] sm:$0xff] }
  0x2c   :  { %1334 = vmatprep.subr.mxu0 %v138_v17  ;;  %373 = vmatprep.mubr.f32.mxu0 %v38_v18  ;;  %v120_v25 = vld [vmem:[%s2446_s1 + $0x248] sm:$0xff]  ;;  %v119_v28 = vld [vmem:[%s2446_s1 + $0x240] sm:$0xff]  ;;  %v134_v29 = vld [vmem:[%s2446_s1 + $0x2b8] sm:$0xff] }
  0x2d   :  { %1335 = vmatpush3.msra.mxu0 %v122_v19  ;;  %1415 = vmatpush3.msra.mxu1 %v144_v16  ;;  %v46_v26 = vld [vmem:[%s2445_s0 + $0x68] sm:$0xff]  ;;  %v118_v30 = vld [vmem:[%s2446_s1 + $0x238] sm:$0xff]  ;;  %v133_v31 = vld [vmem:[%s2446_s1 + $0x2b0] sm:$0xff] }
  0x2e   :  { %1336 = vmatprep.subr.mxu0 %v137_v20  ;;  %1416 = vmatprep.subr.mxu1 %v143_v21  ;;  %v117_v32 = vld [vmem:[%s2446_s1 + $0x230] sm:$0xff]  ;;  %v132_v33 = vld [vmem:[%s2446_s1 + $0x2a8] sm:$0xff]  ;;  %v131_v35 = vld [vmem:[%s2446_s1 + $0x2a0] sm:$0xff] }
  0x2f   :  { %1337 = vmatpush3.msra.mxu0 %v121_v22  ;;  %1417 = vmatpush3.msra.mxu1 %v143_v21  ;;  %v116_v34 = vld [vmem:[%s2446_s1 + $0x228] sm:$0xff]  ;;  %v115_v36 = vld [vmem:[%s2446_s1 + $0x220] sm:$0xff]  ;;  %v130_v37 = vld [vmem:[%s2446_s1 + $0x298] sm:$0xff] }
  0x30   :  { %1338 = vmatprep.subr.mxu0 %v136_v23  ;;  %1418 = vmatprep.mubr.msk.f32.mxu1 %vm152_vm0, %v39_v24  ;;  %v114_v38 = vld [vmem:[%s2446_s1 + $0x218] sm:$0xff]  ;;  %v129_v39 = vld [vmem:[%s2446_s1 + $0x290] sm:$0xff]  ;;  %v128_v41 = vld [vmem:[%s2446_s1 + $0x288] sm:$0xff] }
  0x31   :  { %1339 = vmatpush3.msra.mxu0 %v120_v25  ;;  %1419 = vmatmul.mubr.msk.f32.vlgmr.msra.gmra.mxu1 %vm152_vm0, %v46_v26  ;;  %v113_v40 = vld [vmem:[%s2446_s1 + $0x210] sm:$0xff]  ;;  %v112_v42 = vld [vmem:[%s2446_s1 + $0x208] sm:$0xff]  ;;  %v127_v43 = vld [vmem:[%s2446_s1 + $0x280] sm:$0xff] }
  0x32   :  { %1340 = vmatprep.subr.mxu0 %v135_v27  ;;  %v111_v44 = vld [vmem:[%s2446_s1 + $0x200] sm:$0xff]  ;;  %v44_v47 = vld [vmem:[%s2445_s0 + $0x58] sm:$0xff]  ;;  %v475_v49 = vld [vmem:[%s2448_s3 + $0x70] sm:$0xff] }
  0x33   :  { %1341 = vmatpush3.msra.mxu0 %v119_v28  ;;  %v37_v45 = vld [vmem:[%s2445_s0 + $0x20] sm:$0xff]  ;;  %v476_v48 = vld [vmem:[%s2448_s3 + $0x78] sm:$0xff]  ;;  %v474_v50 = vld [vmem:[%s2448_s3 + $0x68] sm:$0xff] }
  0x34   :  { %1342 = vmatprep.subr.mxu0 %v134_v29  ;;  %v45_v46 = vld [vmem:[%s2445_s0 + $0x60] sm:$0xff]  ;;  %1421 = vmatprep.subr.mxu1 %v476_v48  ;;  %v472_v52 = vld [vmem:[%s2448_s3 + $0x58] sm:$0xff]  ;;  %v471_v53 = vld [vmem:[%s2448_s3 + $0x50] sm:$0xff] }
  0x35   :  { %1343 = vmatpush3.msra.mxu0 %v118_v30  ;;  %1422 = vmatpush3.msra.mxu1 %v476_v48  ;;  %v473_v51 = vld [vmem:[%s2448_s3 + $0x60] sm:$0xff]  ;;  %v470_v54 = vld [vmem:[%s2448_s3 + $0x48] sm:$0xff]  ;;  %v468_v56 = vld [vmem:[%s2448_s3 + $0x38] sm:$0xff] }
  0x36   :  { %1344 = vmatprep.subr.mxu0 %v133_v31  ;;  %1423 = vmatprep.subr.mxu1 %v475_v49  ;;  %v469_v55 = vld [vmem:[%s2448_s3 + $0x40] sm:$0xff]  ;;  %v467_v57 = vld [vmem:[%s2448_s3 + $0x30] sm:$0xff]  ;;  %v466_v58 = vld [vmem:[%s2448_s3 + $0x28] sm:$0xff] }
  0x37   :  { %1345 = vmatpush3.msra.mxu0 %v117_v32  ;;  %1424 = vmatpush3.msra.mxu1 %v475_v49  ;;  %v465_v59 = vld [vmem:[%s2448_s3 + $0x20] sm:$0xff]  ;;  %v464_v60 = vld [vmem:[%s2448_s3 + $0x18] sm:$0xff]  ;;  %v463_v61 = vld [vmem:[%s2448_s3 + $0x10] sm:$0xff] }
  0x38   :  { %1346 = vmatprep.subr.mxu0 %v132_v33  ;;  %1425 = vmatprep.subr.mxu1 %v474_v50  ;;  %v462_v62 = vld [vmem:[%s2448_s3 + $0x8] sm:$0xff]  ;;  %v461_v63 = vld [vmem:[%s2448_s3] sm:$0xff]  ;;  %v568_v0 = vld [vmem:[%s2450_s5 + $0x38] sm:$0xff] }
  0x39   :  { %1347 = vmatpush3.msra.mxu0 %v116_v34  ;;  %1426 = vmatpush3.msra.mxu1 %v474_v50  ;;  %v567_v1 = vld [vmem:[%s2450_s5 + $0x30] sm:$0xff]  ;;  %v566_v2 = vld [vmem:[%s2450_s5 + $0x28] sm:$0xff]  ;;  %v565_v3 = vld [vmem:[%s2450_s5 + $0x20] sm:$0xff] }
  0x3a   :  { %1348 = vmatprep.subr.mxu0 %v131_v35  ;;  %1427 = vmatprep.subr.mxu1 %v473_v51  ;;  %v1229_v11 = vld [vmem:[%s2447_s2] ss:$0 sm:$0xff]  ;;  %v564_v35 = vld [vmem:[%s2450_s5 + $0x18] sm:$0xff]  ;;  %v738_v48 = vld [vmem:[%s2452_s7 + $0x270] sm:$0xff] }
  0x3b   :  { %1349 = vmatpush3.msra.mxu0 %v115_v36  ;;  %1428 = vmatpush3.msra.mxu1 %v473_v51  ;;  %v563_v36 = vld [vmem:[%s2450_s5 + $0x10] sm:$0xff]  ;;  %v737_v49 = vld [vmem:[%s2452_s7 + $0x268] sm:$0xff]  ;;  %v731_v50 = vld [vmem:[%s2452_s7 + $0x238] sm:$0xff] }
  0x3c   :  { %1350 = vmatprep.subr.mxu0 %v130_v37  ;;  %1429 = vmatprep.subr.mxu1 %v472_v52  ;;  %v562_v37 = vld [vmem:[%s2450_s5 + $0x8] sm:$0xff]  ;;  %v730_v51 = vld [vmem:[%s2452_s7 + $0x230] sm:$0xff] }
  0x3d   :  { %1351 = vmatpush3.msra.mxu0 %v114_v38  ;;  %1430 = vmatpush3.msra.mxu1 %v472_v52  ;;  %v561_v38 = vld [vmem:[%s2450_s5] sm:$0xff] }
  0x3e   :  { %1352 = vmatprep.subr.mxu0 %v129_v39  ;;  %1431 = vmatprep.subr.mxu1 %v471_v53  ;;  %v766_v39 = vld [vmem:[%s2452_s7 + $0x350] sm:$0xff]  ;;  %v724_v52 = vld [vmem:[%s2452_s7 + $0x200] sm:$0xff] }
  0x3f   :  { %1353 = vmatpush3.msra.mxu0 %v113_v40  ;;  %1432 = vmatpush3.msra.mxu1 %v471_v53  ;;  %v768_v40 = vld [vmem:[%s2452_s7 + $0x360] sm:$0xff]  ;;  %v723_v53 = vld [vmem:[%s2452_s7 + $0x1f8] sm:$0xff] }
  0x40   :  { %1354 = vmatprep.subr.mxu0 %v128_v41  ;;  %1433 = vmatprep.subr.mxu1 %v470_v54  ;;  %v765_v41 = vld [vmem:[%s2452_s7 + $0x348] sm:$0xff] }
  0x41   :  { %1355 = vmatpush3.msra.mxu0 %v112_v42  ;;  %1434 = vmatpush3.msra.mxu1 %v470_v54  ;;  %v759_v42 = vld [vmem:[%s2452_s7 + $0x318] sm:$0xff]  ;;  %v717_v54 = vld [vmem:[%s2452_s7 + $0x1c8] sm:$0xff] }
  0x42   :  { %1356 = vmatprep.subr.mxu0 %v127_v43  ;;  %1435 = vmatprep.subr.mxu1 %v469_v55  ;;  %v758_v43 = vld [vmem:[%s2452_s7 + $0x310] sm:$0xff] }
  0x43   :  { %1357 = vmatpush3.msra.mxu0 %v111_v44  ;;  %1436 = vmatpush3.msra.mxu1 %v469_v55  ;;  %v752_v44 = vld [vmem:[%s2452_s7 + $0x2e0] sm:$0xff] }
  0x44   :  { %374 = vmatmul.mubr.f32.vlgmr.msra.gmra.mxu0 %v37_v45  ;;  %1437 = vmatprep.subr.mxu1 %v468_v56  ;;  %v751_v45 = vld [vmem:[%s2452_s7 + $0x2d8] sm:$0xff]  ;;  %v716_v55 = vld [vmem:[%s2452_s7 + $0x1c0] sm:$0xff] }
  0x45   :  { %378 = vmatprep.mubr.f32.mxu0 %v45_v46  ;;  %1438 = vmatpush3.msra.mxu1 %v468_v56  ;;  %v745_v46 = vld [vmem:[%s2452_s7 + $0x2a8] sm:$0xff]  ;;  %v710_v56 = vld [vmem:[%s2452_s7 + $0x190] sm:$0xff] }
  0x46   :  { %1439 = vmatprep.subr.mxu1 %v467_v57  ;;  %1456 = vmatprep.subr.mxu0 %v568_v0 }
  0x47   :  { %1440 = vmatpush3.msra.mxu1 %v467_v57  ;;  %1457 = vmatpush3.msra.mxu0 %v568_v0  ;;  %v709_v57 = vld [vmem:[%s2452_s7 + $0x188] sm:$0xff]  ;;  %v682_v0 = vld [vmem:[%s2452_s7 + $0xb0] sm:$0xff] }
  0x48   :  { %379 = vmatmul.mubr.f32.gmra.mxu0 %v44_v47  ;;  %1441 = vmatprep.subr.mxu1 %v466_v58  ;;  %v744_v47 = vld [vmem:[%s2452_s7 + $0x2a0] sm:$0xff] }
  0x49   :  { %1442 = vmatpush3.msra.mxu1 %v466_v58  ;;  %1458 = vmatprep.subr.mxu0 %v567_v1  ;;  %v703_v58 = vld [vmem:[%s2452_s7 + $0x158] sm:$0xff] }
  0x4a   :  { %1443 = vmatprep.subr.mxu1 %v465_v59  ;;  %1459 = vmatpush3.msra.mxu0 %v567_v1  ;;  %v681_v1 = vld [vmem:[%s2452_s7 + $0xa8] sm:$0xff] }
  0x4b   :  { %1444 = vmatpush3.msra.mxu1 %v465_v59  ;;  %1460 = vmatprep.subr.mxu0 %v566_v2  ;;  %v702_v59 = vld [vmem:[%s2452_s7 + $0x150] sm:$0xff] }
  0x4c   :  { %1445 = vmatprep.subr.mxu1 %v464_v60  ;;  %1461 = vmatpush3.msra.mxu0 %v566_v2  ;;  %v1232_v2 = vld [vmem:[%s2449_s4] ss:$0 sm:$0xff] }
  0x4d   :  { %1446 = vmatpush3.msra.mxu1 %v464_v60  ;;  %1462 = vmatprep.subr.mxu0 %v565_v3  ;;  %v696_v60 = vld [vmem:[%s2452_s7 + $0x120] sm:$0xff] }
  0x4e   :  { %1447 = vmatprep.subr.mxu1 %v463_v61  ;;  %1463 = vmatpush3.msra.mxu0 %v565_v3 }
  0x4f   :  { %1448 = vmatpush3.msra.mxu1 %v463_v61  ;;  %1464 = vmatprep.subr.mxu0 %v564_v35  ;;  %v695_v61 = vld [vmem:[%s2452_s7 + $0x118] sm:$0xff] }
  0x50   :  { %1449 = vmatprep.subr.mxu1 %v462_v62  ;;  %1465 = vmatpush3.msra.mxu0 %v564_v35  ;;  %v677_v35 = vld [vmem:[%s2452_s7 + $0x88] sm:$0xff] }
  0x51   :  { %1450 = vmatpush3.msra.mxu1 %v462_v62  ;;  %1466 = vmatprep.subr.mxu0 %v563_v36  ;;  %v689_v62 = vld [vmem:[%s2452_s7 + $0xe8] sm:$0xff] }
  0x52   :  { %1451 = vmatprep.subr.mxu1 %v461_v63  ;;  %1467 = vmatpush3.msra.mxu0 %v563_v36  ;;  %v674_v36 = vld [vmem:[%s2452_s7 + $0x70] sm:$0xff] }
  0x53   :  { %1452 = vmatpush3.msra.mxu1 %v461_v63  ;;  %1468 = vmatprep.subr.mxu0 %v562_v37  ;;  %v688_v63 = vld [vmem:[%s2452_s7 + $0xe0] sm:$0xff] }
  0x54   :  { %1469 = vmatpush3.msra.mxu0 %v562_v37  ;;  %809 = vmatprep.subr.mxu1 %v766_v39  ;;  %v676_v37 = vld [vmem:[%s2452_s7 + $0x80] sm:$0xff]  ;;  %v670_v39 = vld [vmem:[%s2452_s7 + $0x50] sm:$0xff] }
  0x55   :  { %1470 = vmatprep.subr.mxu0 %v561_v38 }
  0x56   :  { %1471 = vmatpush3.msra.mxu0 %v561_v38  ;;  %v668_v38 = vld [vmem:[%s2452_s7 + $0x40] sm:$0xff] }
  0x57   :  { %886 = vmatprep.subr.mxu0 %v768_v40  ;;  %v667_v40 = vld [vmem:[%s2452_s7 + $0x38] sm:$0xff] }
  0xe2   :  { %v1282_v4 = vpop.f32.mrf.mxu0 }
  0xe4   :  { %v1283_v6 = vpop.f32.mrf.mxu0 }
  0xe5   :  { %v1320_v5 = vpop.f32.mrf.mxu1  ;;  %v1284_v10 = vadd.f32 %v1283_v6, %v1282_v4 }
  0xe7   :  { %v1321_v7 = vpop.f32.mrf.mxu1  ;;  %v226_v14 = vadd.f32 %v1284_v10, %v1229_v11  ;;  %v761_v10 = vld [vmem:[%s2452_s7 + $0x328] sm:$0xff] }
  0xe8   :  { %v1285_v8 = vpop.f32.mrf.mxu0  ;;  %v1322_v15 = vadd.f32 %v1321_v7, %v1320_v5 }
  0xea   :  { %v1323_v9 = vpop.f32.mrf.mxu1  ;;  %v1286_v12 = vpop.f32.mrf.mxu0  ;;  %v301_v20 = vadd.f32 %v1322_v15, %v226_v14  ;;  %v747_v14 = vld [vmem:[%s2452_s7 + $0x2b8] sm:$0xff]  ;;  %v746_v15 = vld [vmem:[%s2452_s7 + $0x2b0] sm:$0xff] }
  0xeb   :  { %v1287_v16 = vadd.f32 %v1286_v12, %v1285_v8  ;;  %v754_v12 = vld [vmem:[%s2452_s7 + $0x2f0] sm:$0xff] }
  0xec   :  { %v1324_v13 = vpop.f32.mrf.mxu1 }
  0xed   :  { %v231_v21 = vadd.f32 %v1287_v16, %v1229_v11  ;;  %v1325_v22 = vadd.f32 %v1324_v13, %v1323_v9  ;;  %v767_v9 = vld [vmem:[%s2452_s7 + $0x358] sm:$0xff]  ;;  %v760_v11 = vld [vmem:[%s2452_s7 + $0x320] sm:$0xff]  ;;  %v753_v13 = vld [vmem:[%s2452_s7 + $0x2e8] sm:$0xff] }
  0xee   :  { %v740_v16 = vld [vmem:[%s2452_s7 + $0x280] sm:$0xff] }
  0xef   :  { %v306_v28 = vadd.f32 %v1325_v22, %v231_v21  ;;  %v725_v21 = vld [vmem:[%s2452_s7 + $0x208] sm:$0xff]  ;;  %v719_v22 = vld [vmem:[%s2452_s7 + $0x1d8] sm:$0xff] }
  0xf1   :  { %v1420_v18 = vpop.f32.mrf.mxu1 }
  0xf3   :  { %v450_v25 = vpop.f32.mrf.mxu1 }
 0x104   :  { %v1358_v17 = vpop.f32.mrf.mxu0 }
 0x106   :  { %v1359_v19 = vpop.f32.mrf.mxu0 }
 0x107   :  { %v1360_v23 = vadd.f32 %v1359_v19, %v1358_v17  ;;  %v739_v17 = vld [vmem:[%s2452_s7 + $0x278] sm:$0xff]  ;;  %v732_v19 = vld [vmem:[%s2452_s7 + $0x240] sm:$0xff] }
 0x108   :  { %v1361_v24 = vpop.f32.mrf.mxu0 }
 0x109   :  { %v376_v26 = vadd.f32 %v1360_v23, %v301_v20  ;;  %v726_v20 = vld [vmem:[%s2452_s7 + $0x210] sm:$0xff] }
 0x10a   :  { %v1362_v27 = vpop.f32.mrf.mxu0  ;;  %v718_v23 = vld [vmem:[%s2452_s7 + $0x1d0] sm:$0xff] }
 0x10b   :  { %v1363_v29 = vadd.f32 %v1362_v27, %v1361_v24  ;;  %v451_v30 = vadd.f32 %v450_v25, %v376_v26  ;;  %v712_v24 = vld [vmem:[%s2452_s7 + $0x1a0] sm:$0xff]  ;;  %v711_v25 = vld [vmem:[%s2452_s7 + $0x198] sm:$0xff]  ;;  %v705_v26 = vld [vmem:[%s2452_s7 + $0x168] sm:$0xff] }
 0x10c   :  { %v704_v27 = vld [vmem:[%s2452_s7 + $0x160] sm:$0xff] }
 0x10d   :  { %v381_v31 = vadd.f32 %v1363_v29, %v306_v28  ;;  %v459_v32 = vmax.f32 %v451_v30, 0.0  ;;  %v698_v28 = vld [vmem:[%s2452_s7 + $0x130] sm:$0xff]  ;;  %v697_v29 = vld [vmem:[%s2452_s7 + $0x128] sm:$0xff]  ;;  %v691_v30 = vld [vmem:[%s2452_s7 + $0xf8] sm:$0xff] }
 0x10f   :  { %v456_v33 = vadd.f32 %v1420_v18, %v381_v31  ;;  %1453 = vmatprep.mubr.f32.mxu1 %v459_v32  ;;  %v733_v18 = vld [vmem:[%s2452_s7 + $0x248] sm:$0xff]  ;;  %v690_v31 = vld [vmem:[%s2452_s7 + $0xf0] sm:$0xff]  ;;  %v684_v32 = vld [vmem:[%s2452_s7 + $0xc0] sm:$0xff] }
 0x111   :  { %v460_v34 = vmax.f32 %v456_v33, 0.0  ;;  %v683_v33 = vld [vmem:[%s2452_s7 + $0xb8] sm:$0xff] }
 0x113   :  { %1454 = vmatmul.mubr.f32.vlgmr.msra.gmra.mxu1 %v460_v34  ;;  %v675_v34 = vld [vmem:[%s2452_s7 + $0x78] sm:$0xff] }
 0x114   :  { %810 = vmatpush1.msra.mxu1 %v765_v41  ;;  %v669_v41 = vld [vmem:[%s2452_s7 + $0x48] sm:$0xff] }
 0x115   :  { %811 = vmatprep.subr.mxu1 %v759_v42  ;;  %v661_v42 = vld [vmem:[%s2452_s7 + $0x8] sm:$0xff] }
 0x116   :  { %812 = vmatpush1.msra.mxu1 %v758_v43  ;;  %v663_v43 = vld [vmem:[%s2452_s7 + $0x18] sm:$0xff] }
 0x117   :  { %813 = vmatprep.subr.mxu1 %v752_v44  ;;  %v660_v44 = vld [vmem:[%s2452_s7] sm:$0xff] }
 0x118   :  { %814 = vmatpush1.msra.mxu1 %v751_v45  ;;  %v662_v45 = vld [vmem:[%s2452_s7 + $0x10] sm:$0xff] }
 0x119   :  { %815 = vmatprep.subr.mxu1 %v745_v46  ;;  %v770_v46 = vld [vmem:[%s2452_s7 + $0x370] sm:$0xff] }
 0x11a   :  { %816 = vmatpush1.msra.mxu1 %v744_v47  ;;  %v771_v47 = vld [vmem:[%s2452_s7 + $0x378] sm:$0xff] }
 0x11b   :  { %817 = vmatprep.subr.mxu1 %v738_v48  ;;  %v1592_v48 = vmov 0.0  }
 0x11c   :  { %818 = vmatpush1.msra.mxu1 %v737_v49  ;;  %873 = vmatprep.mubr.f32.mxu1 %v1592_v48 }
 0x11d   :  { %819 = vmatprep.subr.mxu1 %v731_v50  ;;  %v1233_v50 = vld [vmem:[%s2451_s6] ss:$0 sm:$0xff] }
 0x11e   :  { %820 = vmatpush1.msra.mxu1 %v730_v51 }
 0x11f   :  { %821 = vmatprep.subr.mxu1 %v724_v52 }
 0x120   :  { %822 = vmatpush1.msra.mxu1 %v723_v53 }
 0x121   :  { %823 = vmatprep.subr.mxu1 %v717_v54  ;;  %v769_v54 = vld [vmem:[%s2452_s7 + $0x368] sm:$0xff] }
 0x122   :  { %824 = vmatpush1.msra.mxu1 %v716_v55  ;;  %v763_v55 = vld [vmem:[%s2452_s7 + $0x338] sm:$0xff] }
 0x123   :  { %825 = vmatprep.subr.mxu1 %v710_v56  ;;  %v764_v56 = vld [vmem:[%s2452_s7 + $0x340] sm:$0xff] }
 0x124   :  { %826 = vmatpush1.msra.mxu1 %v709_v57 }
 0x125   :  { %827 = vmatprep.subr.mxu1 %v703_v58  ;;  %v762_v58 = vld [vmem:[%s2452_s7 + $0x330] sm:$0xff] }
 0x126   :  { %828 = vmatpush1.msra.mxu1 %v702_v59  ;;  %v756_v59 = vld [vmem:[%s2452_s7 + $0x300] sm:$0xff] }
 0x127   :  { %829 = vmatprep.subr.mxu1 %v696_v60  ;;  %v757_v60 = vld [vmem:[%s2452_s7 + $0x308] sm:$0xff] }
 0x128   :  { %830 = vmatpush1.msra.mxu1 %v695_v61 }
 0x129   :  { %831 = vmatprep.subr.mxu1 %v689_v62  ;;  %v755_v62 = vld [vmem:[%s2452_s7 + $0x2f8] sm:$0xff] }
 0x12a   :  { %832 = vmatpush1.msra.mxu1 %v688_v63  ;;  %v749_v63 = vld [vmem:[%s2452_s7 + $0x2c8] sm:$0xff] }
 0x12b   :  { %833 = vmatprep.subr.mxu1 %v682_v0  ;;  %v750_v0 = vld [vmem:[%s2452_s7 + $0x2d0] sm:$0xff] }
 0x12c   :  { %834 = vmatpush1.msra.mxu1 %v681_v1  ;;  %v748_v1 = vld [vmem:[%s2452_s7 + $0x2c0] sm:$0xff] }
 0x12d   :  { %835 = vmatprep.subr.mxu1 %v675_v34  ;;  %v671_v34 = vld [vmem:[%s2452_s7 + $0x58] sm:$0xff] }
 0x12e   :  { %836 = vmatpush1.msra.mxu1 %v674_v36  ;;  %v666_v36 = vld [vmem:[%s2452_s7 + $0x30] sm:$0xff] }
 0x12f   :  { %837 = vmatprep.subr.mxu1 %v668_v38  ;;  %v774_v38 = vlaneseq }
 0x130   :  { %838 = vmatpush1.msra.mxu1 %v667_v40 }
 0x131   :  { %839 = vmatprep.subr.mxu1 %v661_v42  ;;  %v2426_v42 = vld [vmem:[%s2453_s8] sm:$0x7f]  ;;  %s1593_s8 = smov [#allocation2]  }
 0x132   :  { %840 = vmatpush1.msra.mxu1 %v660_v44  ;;  %s1218_s11 = sshll.u32 %s1593_s8, 4  ;;  %s1219_s11 = int_to_ptr.vmem [resolvable:$true] %s1218_s11 }
 0x133   :  { %963 = vmatprep.subr.mxu1 %v770_v46  ;;  %s1570_s12 = scalar_lea.vmem %s1219_s11, 1792  ;;  %p1575_p1 = scmp.lt.s32.totalorder %s1219_s11, %s1219_s11 }
 0x134   :  { %p1571_p0 = scmp.ne.s32.totalorder %s1219_s11, %s1570_s12  ;;  %p1576_p2 = scmp.lt.s32.totalorder %s1570_s12, %s1570_s12 }
 0x136   :  { %p1577_p3 = por %p1576_p2, %p1575_p1 }
 0x138   :  { %p1578_p4 = pnand %p1577_p3, %p1571_p0 }
 0x1d3   :  { %v1455_v3 = vpop.f32.mrf.mxu1 }
 0x1d4   :  { %v556_v4 = vadd.f32 %v1455_v3, %v1232_v2  ;;  %v743_v3 = vld [vmem:[%s2452_s7 + $0x298] sm:$0xff] }
 0x1d5   :  { %v550_v5 = vpop.f32.mrf.mxu1 }
 0x1d6   :  { %v551_v6 = vadd.f32 %v1232_v2, %v550_v5  ;;  %v560_v8 = vmax.f32 %v556_v4, 0.0  ;;  %v742_v2 = vld [vmem:[%s2452_s7 + $0x290] sm:$0xff]  ;;  %v741_v4 = vld [vmem:[%s2452_s7 + $0x288] sm:$0xff]  ;;  %v735_v5 = vld [vmem:[%s2452_s7 + $0x258] sm:$0xff] }
 0x1d8   :  { %v559_v7 = vmax.f32 %v551_v6, 0.0  ;;  %v736_v6 = vld [vmem:[%s2452_s7 + $0x260] sm:$0xff] }
 0x1da   :  { %1472 = vmatprep.mubr.msk.f32.mxu0 %vm576_vm1, %v559_v7  ;;  %v734_v7 = vld [vmem:[%s2452_s7 + $0x250] sm:$0xff] }
 0x1db   :  { %1473 = vmatmul.mubr.msk.f32.vlgmr.msra.gmra.mxu0 %vm576_vm1, %v560_v8  ;;  %v728_v8 = vld [vmem:[%s2452_s7 + $0x220] sm:$0xff] }
 0x1dc   :  { %887 = vmatpush1.msra.mxu0 %v767_v9  ;;  %950 = vmatprep.mubr.f32.mxu0 %v1592_v48  ;;  %v729_v9 = vld [vmem:[%s2452_s7 + $0x228] sm:$0xff] }
 0x1dd   :  { %888 = vmatprep.subr.mxu0 %v761_v10  ;;  %v727_v10 = vld [vmem:[%s2452_s7 + $0x218] sm:$0xff] }
 0x1de   :  { %889 = vmatpush1.msra.mxu0 %v760_v11  ;;  %v721_v11 = vld [vmem:[%s2452_s7 + $0x1e8] sm:$0xff] }
 0x1df   :  { %890 = vmatprep.subr.mxu0 %v754_v12  ;;  %v722_v12 = vld [vmem:[%s2452_s7 + $0x1f0] sm:$0xff] }
 0x1e0   :  { %891 = vmatpush1.msra.mxu0 %v753_v13  ;;  %v720_v13 = vld [vmem:[%s2452_s7 + $0x1e0] sm:$0xff] }
 0x1e1   :  { %892 = vmatprep.subr.mxu0 %v747_v14  ;;  %v714_v14 = vld [vmem:[%s2452_s7 + $0x1b0] sm:$0xff] }
 0x1e2   :  { %893 = vmatpush1.msra.mxu0 %v746_v15  ;;  %v715_v15 = vld [vmem:[%s2452_s7 + $0x1b8] sm:$0xff] }
 0x1e3   :  { %894 = vmatprep.subr.mxu0 %v740_v16  ;;  %v713_v16 = vld [vmem:[%s2452_s7 + $0x1a8] sm:$0xff] }
 0x1e4   :  { %895 = vmatpush1.msra.mxu0 %v739_v17  ;;  %v707_v17 = vld [vmem:[%s2452_s7 + $0x178] sm:$0xff] }
 0x1e5   :  { %896 = vmatprep.subr.mxu0 %v733_v18  ;;  %v708_v18 = vld [vmem:[%s2452_s7 + $0x180] sm:$0xff] }
 0x1e6   :  { %897 = vmatpush1.msra.mxu0 %v732_v19  ;;  %v706_v19 = vld [vmem:[%s2452_s7 + $0x170] sm:$0xff] }
 0x1e7   :  { %898 = vmatprep.subr.mxu0 %v726_v20  ;;  %v700_v20 = vld [vmem:[%s2452_s7 + $0x140] sm:$0xff] }
 0x1e8   :  { %899 = vmatpush1.msra.mxu0 %v725_v21  ;;  %v701_v21 = vld [vmem:[%s2452_s7 + $0x148] sm:$0xff] }
 0x1e9   :  { %900 = vmatprep.subr.mxu0 %v719_v22  ;;  %v699_v22 = vld [vmem:[%s2452_s7 + $0x138] sm:$0xff] }
 0x1ea   :  { %901 = vmatpush1.msra.mxu0 %v718_v23  ;;  %v693_v23 = vld [vmem:[%s2452_s7 + $0x108] sm:$0xff] }
 0x1eb   :  { %902 = vmatprep.subr.mxu0 %v712_v24  ;;  %v694_v24 = vld [vmem:[%s2452_s7 + $0x110] sm:$0xff] }
 0x1ec   :  { %903 = vmatpush1.msra.mxu0 %v711_v25  ;;  %v692_v25 = vld [vmem:[%s2452_s7 + $0x100] sm:$0xff] }
 0x1ed   :  { %904 = vmatprep.subr.mxu0 %v705_v26  ;;  %v686_v26 = vld [vmem:[%s2452_s7 + $0xd0] sm:$0xff] }
 0x1ee   :  { %905 = vmatpush1.msra.mxu0 %v704_v27  ;;  %v687_v27 = vld [vmem:[%s2452_s7 + $0xd8] sm:$0xff] }
 0x1ef   :  { %906 = vmatprep.subr.mxu0 %v698_v28  ;;  %v685_v28 = vld [vmem:[%s2452_s7 + $0xc8] sm:$0xff] }
 0x1f0   :  { %907 = vmatpush1.msra.mxu0 %v697_v29  ;;  %v679_v29 = vld [vmem:[%s2452_s7 + $0x98] sm:$0xff] }
 0x1f1   :  { %908 = vmatprep.subr.mxu0 %v691_v30  ;;  %v680_v30 = vld [vmem:[%s2452_s7 + $0xa0] sm:$0xff] }
 0x1f2   :  { %909 = vmatpush1.msra.mxu0 %v690_v31  ;;  %v678_v31 = vld [vmem:[%s2452_s7 + $0x90] sm:$0xff] }
 0x1f3   :  { %910 = vmatprep.subr.mxu0 %v684_v32  ;;  %v672_v32 = vld [vmem:[%s2452_s7 + $0x60] sm:$0xff] }
 0x1f4   :  { %911 = vmatpush1.msra.mxu0 %v683_v33  ;;  %v673_v33 = vld [vmem:[%s2452_s7 + $0x68] sm:$0xff] }
 0x1f5   :  { %912 = vmatprep.subr.mxu0 %v677_v35  ;;  %v665_v35 = vld [vmem:[%s2452_s7 + $0x28] sm:$0xff] }
 0x1f6   :  { %913 = vmatpush1.msra.mxu0 %v676_v37  ;;  %v664_v37 = vld [vmem:[%s2452_s7 + $0x20] sm:$0xff] }
 0x1f7   :  { %914 = vmatprep.subr.mxu0 %v670_v39  ;;  %v2419_v39 = vshrl.u32 %v774_v38, 7 }
 0x1f8   :  { %915 = vmatpush1.msra.mxu0 %v669_v41 }
 0x1f9   :  { %916 = vmatprep.subr.mxu0 %v663_v43  ;;  %v776_v40 = vsub.s32 0, %v2419_v39  ;;  %v784_v41 = vsub.s32 2, %v2419_v39  ;;  %v780_v43 = vsub.s32 1, %v2419_v39  ;;  %v788_v44 = vsub.s32 3, %v2419_v39 }
 0x1fa   :  { %917 = vmatpush1.msra.mxu0 %v662_v45 }
 0x1fb   :  { %1475 = vmatprep.subr.mxu0 %v771_v47  ;;  %v777_v45 = vrot.slane %v2426_v42, %v776_v40  ;;  %v785_v46 = vrot.slane %v2426_v42, %v784_v41 }
 0x29b   :  { %v1474_v49 = vpop.f32.mrf.mxu0 }
 0x29c   :  { %v655_v57 = vadd.f32 %v1474_v49, %v1233_v50 }
 0x29d   :  { %v649_v51 = vpop.f32.mrf.mxu0 }
 0x29e   :  { %v650_v52 = vadd.f32 %v1233_v50, %v649_v51  ;;  %v2287_v61 = vmax.f32 %v655_v57, 0.0 }
 0x2a0   :  { %v2265_v53 = vmax.f32 %v650_v52, 0.0 }
 0x2a2   :  { %874 = vmatmul.mubr.f32.vlgmr.msra.gmra.mxu1 %v2265_v53  ;;  %951 = vmatmul.mubr.f32.vlgmr.msra.gmra.mxu0 %v2265_v53 }
 0x2a3   :  { %964 = vmatpush1.msra.mxu1 %v769_v54  ;;  %1476 = vmatpush3.msra.mxu0 %v771_v47  ;;  %v781_v47 = vrot.slane %v2426_v42, %v780_v43 }
 0x2a4   :  { %965 = vmatprep.subr.mxu1 %v763_v55  ;;  %1477 = vmatprep.subr.mxu0 %v764_v56 }
 0x2a5   :  { %966 = vmatpush1.msra.mxu1 %v762_v58  ;;  %1478 = vmatpush3.msra.mxu0 %v764_v56 }
 0x2a6   :  { %879 = vmatprep.mubr.f32.mxu1 %v1592_v48  ;;  %956 = vmatprep.mubr.f32.mxu0 %v1592_v48 }
 0x2a7   :  { %967 = vmatprep.subr.mxu1 %v756_v59  ;;  %1479 = vmatprep.subr.mxu0 %v757_v60 }
 0x2a8   :  { %880 = vmatmul.mubr.f32.gmra.mxu1 %v2287_v61  ;;  %957 = vmatmul.mubr.f32.gmra.mxu0 %v2287_v61 }
 0x2a9   :  { %968 = vmatpush1.msra.mxu1 %v755_v62  ;;  %1480 = vmatpush3.msra.mxu0 %v757_v60 }
 0x2aa   :  { %969 = vmatprep.subr.mxu1 %v749_v63  ;;  %1481 = vmatprep.subr.mxu0 %v750_v0 }
 0x2ab   :  { %1507 = vmatprep.mubr.f32.mxu0 %v2265_v53  ;;  %970 = vmatpush1.msra.mxu1 %v748_v1 }
 0x2ac   :  { %1482 = vmatpush3.msra.mxu0 %v750_v0  ;;  %971 = vmatprep.subr.mxu1 %v742_v2 }
 0x2ad   :  { %1483 = vmatprep.subr.mxu0 %v743_v3  ;;  %972 = vmatpush1.msra.mxu1 %v741_v4 }
 0x2ae   :  { %1484 = vmatpush3.msra.mxu0 %v743_v3  ;;  %973 = vmatprep.subr.mxu1 %v735_v5 }
 0x2af   :  { %1485 = vmatprep.subr.mxu0 %v736_v6  ;;  %974 = vmatpush1.msra.mxu1 %v734_v7 }
 0x2b0   :  { %1486 = vmatpush3.msra.mxu0 %v736_v6  ;;  %975 = vmatprep.subr.mxu1 %v728_v8 }
 0x2b1   :  { %1487 = vmatprep.subr.mxu0 %v729_v9  ;;  %976 = vmatpush1.msra.mxu1 %v727_v10 }
 0x2b2   :  { %1488 = vmatpush3.msra.mxu0 %v729_v9  ;;  %977 = vmatprep.subr.mxu1 %v721_v11 }
 0x2b3   :  { %1489 = vmatprep.subr.mxu0 %v722_v12  ;;  %978 = vmatpush1.msra.mxu1 %v720_v13 }
 0x2b4   :  { %1490 = vmatpush3.msra.mxu0 %v722_v12  ;;  %979 = vmatprep.subr.mxu1 %v714_v14 }
 0x2b5   :  { %1491 = vmatprep.subr.mxu0 %v715_v15  ;;  %980 = vmatpush1.msra.mxu1 %v713_v16 }
 0x2b6   :  { %1492 = vmatpush3.msra.mxu0 %v715_v15  ;;  %981 = vmatprep.subr.mxu1 %v707_v17 }
 0x2b7   :  { %1493 = vmatprep.subr.mxu0 %v708_v18  ;;  %982 = vmatpush1.msra.mxu1 %v706_v19 }
 0x2b8   :  { %1494 = vmatpush3.msra.mxu0 %v708_v18  ;;  %983 = vmatprep.subr.mxu1 %v700_v20 }
 0x2b9   :  { %1495 = vmatprep.subr.mxu0 %v701_v21  ;;  %984 = vmatpush1.msra.mxu1 %v699_v22 }
 0x2ba   :  { %1496 = vmatpush3.msra.mxu0 %v701_v21  ;;  %985 = vmatprep.subr.mxu1 %v693_v23 }
 0x2bb   :  { %1497 = vmatprep.subr.mxu0 %v694_v24  ;;  %986 = vmatpush1.msra.mxu1 %v692_v25  ;;  %v792_v25 = vsub.s32 4, %v2419_v39 }
 0x2bc   :  { %1498 = vmatpush3.msra.mxu0 %v694_v24  ;;  %987 = vmatprep.subr.mxu1 %v686_v26  ;;  %v800_v26 = vsub.s32 6, %v2419_v39 }
 0x2bd   :  { %1499 = vmatprep.subr.mxu0 %v687_v27  ;;  %988 = vmatpush1.msra.mxu1 %v685_v28  ;;  %v793_v28 = vrot.slane %v2426_v42, %v792_v25 }
 0x2be   :  { %1500 = vmatpush3.msra.mxu0 %v687_v27  ;;  %989 = vmatprep.subr.mxu1 %v679_v29  ;;  %v796_v27 = vsub.s32 5, %v2419_v39  ;;  %v801_v29 = vrot.slane %v2426_v42, %v800_v26 }
 0x2bf   :  { %1501 = vmatprep.subr.mxu0 %v680_v30  ;;  %990 = vmatpush1.msra.mxu1 %v678_v31 }
 0x2c0   :  { %1502 = vmatpush3.msra.mxu0 %v680_v30  ;;  %991 = vmatprep.subr.mxu1 %v672_v32  ;;  %v797_v31 = vrot.slane %v2426_v42, %v796_v27 }
 0x2c1   :  { %1503 = vmatprep.subr.mxu0 %v673_v33  ;;  %992 = vmatpush1.msra.mxu1 %v671_v34 }
 0x2c2   :  { %1504 = vmatpush3.msra.mxu0 %v673_v33  ;;  %993 = vmatprep.subr.mxu1 %v665_v35 }
 0x2c3   :  { %1505 = vmatprep.subr.mxu0 %v666_v36  ;;  %994 = vmatpush1.msra.mxu1 %v664_v37 }
 0x2c4   :  { %1027 = vmatprep.mubr.f32.mxu1 %v1592_v48  ;;  %1506 = vmatpush3.msra.mxu0 %v666_v36 }
 0x2c5   :  { %1028 = vmatmul.mubr.f32.vlgmr.msra.gmra.mxu1 %v2265_v53  ;;  %1508 = vmatmul.mubr.f32.vlgmr.msra.gmra.mxu0 %v2287_v61 }
 0x2c6   :  { %1033 = vmatprep.mubr.f32.mxu1 %v1592_v48  ;;  %v789_v48 = vrot.slane %v2426_v42, %v788_v44 }
 0x2c9   :  { %1034 = vmatmul.mubr.f32.gmra.mxu1 %v2287_v61 }
 0x362   :  { %v875_v49 = vpop.f32.mrf.mxu1  ;;  %v952_v50 = vpop.f32.mrf.mxu0 }
 0x363   :  { %v876_v51 = vadd.f32 %v875_v49, %v777_v45  ;;  %v953_v52 = vadd.f32 %v952_v50, %v785_v46 }
 0x364   :  { %v877_v53 = vpop.f32.mrf.mxu1  ;;  %v954_v54 = vpop.f32.mrf.mxu0 }
 0x365   :  { %v1236_v55 = vmul.f32 -1.442695, %v876_v51  ;;  %v1238_v56 = vmul.f32 -1.442695, %v953_v52  ;;  %v878_v57 = vadd.f32 %v877_v53, %v781_v47  ;;  %v955_v58 = vadd.f32 %v954_v54, %v789_v48 }
 0x367   :  { %1514 = vpow2.f32 %v1236_v55  ;;  %v1237_v59 = vmul.f32 -1.442695, %v878_v57  ;;  %v1239_v60 = vmul.f32 -1.442695, %v955_v58 }
 0x368   :  { %1516 = vpow2.f32 %v1238_v56  ;;  %v881_v61 = vpop.f32.mrf.mxu1  ;;  %v958_v62 = vpop.f32.mrf.mxu0 }
 0x369   :  { %1518 = vpow2.f32 %v1237_v59  ;;  %v882_v63 = vadd.f32 %v881_v61, %v777_v45  ;;  %v959_v0 = vadd.f32 %v958_v62, %v785_v46 }
 0x36a   :  { %1520 = vpow2.f32 %v1239_v60  ;;  %v883_v1 = vpop.f32.mrf.mxu1  ;;  %v960_v2 = vpop.f32.mrf.mxu0 }
 0x36b   :  { %v1243_v3 = vmul.f32 -1.442695, %v882_v63  ;;  %v1245_v4 = vmul.f32 -1.442695, %v959_v0  ;;  %v884_v5 = vadd.f32 %v883_v1, %v781_v47  ;;  %v961_v6 = vadd.f32 %v960_v2, %v789_v48 }
 0x36d   :  { %1522 = vpow2.f32 %v1243_v3  ;;  %v1244_v7 = vmul.f32 -1.442695, %v884_v5  ;;  %v1246_v8 = vmul.f32 -1.442695, %v961_v6 }
 0x36e   :  { %1524 = vpow2.f32 %v1245_v4 }
 0x36f   :  { %1526 = vpow2.f32 %v1244_v7 }
 0x370   :  { %1528 = vpow2.f32 %v1246_v8 }
 0x374   :  { %v1515_v9 = vpop.eup %1514 }
 0x375   :  { %v1517_v10 = vpop.eup %1516  ;;  %v1157_v11 = vadd.f32 1.0, %v1515_v9 }
 0x376   :  { %v1519_v12 = vpop.eup %1518  ;;  %v1159_v13 = vadd.f32 1.0, %v1517_v10 }
 0x377   :  { %v1521_v14 = vpop.eup %1520  ;;  %1530 = vrcp.f32 %v1157_v11  ;;  %v1158_v15 = vadd.f32 1.0, %v1519_v12 }
 0x378   :  { %1532 = vrcp.f32 %v1159_v13  ;;  %v1160_v16 = vadd.f32 1.0, %v1521_v14 }
 0x379   :  { %1534 = vrcp.f32 %v1158_v15 }
 0x37a   :  { %v1523_v17 = vpop.eup %1522  ;;  %1536 = vrcp.f32 %v1160_v16 }
 0x37b   :  { %v1525_v18 = vpop.eup %1524  ;;  %v1164_v19 = vadd.f32 1.0, %v1523_v17 }
 0x37c   :  { %v1527_v20 = vpop.eup %1526  ;;  %v1166_v21 = vadd.f32 1.0, %v1525_v18 }
 0x37d   :  { %v1529_v22 = vpop.eup %1528  ;;  %1538 = vrcp.f32 %v1164_v19  ;;  %v1165_v23 = vadd.f32 1.0, %v1527_v20 }
 0x37e   :  { %1540 = vrcp.f32 %v1166_v21  ;;  %v1167_v24 = vadd.f32 1.0, %v1529_v22 }
 0x37f   :  { %1542 = vrcp.f32 %v1165_v23 }
 0x380   :  { %1544 = vrcp.f32 %v1167_v24 }
 0x384   :  { %v1531_v30 = vpop.eup %1530 }
 0x385   :  { %v1533_v32 = vpop.eup %1532  ;;  %1199 = vst [vmem:[#allocation2] sm:$0xff] %v1531_v30  ;;  %v1029_v33 = vpop.f32.mrf.mxu1 }
 0x386   :  { %v1509_v34 = vpop.f32.mrf.mxu0  ;;  %v1535_v35 = vpop.eup %1534  ;;  %1201 = vst [vmem:[#allocation2 + $0x10] sm:$0xff] %v1533_v32  ;;  %v1030_v36 = vadd.f32 %v1029_v33, %v793_v28 }
 0x387   :  { %v1112_v37 = vadd.f32 %v1509_v34, %v801_v29  ;;  %v1537_v38 = vpop.eup %1536  ;;  %1200 = vst [vmem:[#allocation2 + $0x8] sm:$0xff] %v1535_v35  ;;  %v1031_v40 = vpop.f32.mrf.mxu1 }
 0x388   :  { %v1106_v41 = vpop.f32.mrf.mxu0  ;;  %1202 = vst [vmem:[#allocation2 + $0x18] sm:$0xff] %v1537_v38  ;;  %v1240_v39 = vmul.f32 -1.442695, %v1030_v36  ;;  %v1032_v44 = vadd.f32 %v1031_v40, %v797_v31 }
 0x389   :  { %v1249_v43 = vmul.f32 -1.442695, %v1112_v37  ;;  %v1107_v45 = vadd.f32 %v1106_v41, %v801_v29  ;;  %v1035_v46 = vpop.f32.mrf.mxu1 }
 0x38a   :  { %v1539_v47 = vpop.eup %1538  ;;  %1546 = vpow2.f32 %v1240_v39  ;;  %v1241_v42 = vmul.f32 -1.442695, %v1032_v44  ;;  %v1036_v49 = vadd.f32 %v1035_v46, %v793_v28 }
 0x38b   :  { %v1242_v48 = vmul.f32 -1.442695, %v1107_v45  ;;  %v1541_v50 = vpop.eup %1540  ;;  %1206 = vst [vmem:[#allocation2 + $0x38] sm:$0xff] %v1539_v47  ;;  %1548 = vpow2.f32 %v1249_v43  ;;  %v1037_v51 = vpop.f32.mrf.mxu1 }
 0x38c   :  { %v1543_v52 = vpop.eup %1542  ;;  %1208 = vst [vmem:[#allocation2 + $0x48] sm:$0xff] %v1541_v50  ;;  %1550 = vpow2.f32 %v1241_v42  ;;  %v1247_v53 = vmul.f32 -1.442695, %v1036_v49  ;;  %v1038_v54 = vadd.f32 %v1037_v51, %v797_v31 }
 0x38d   :  { %v1545_v55 = vpop.eup %1544  ;;  %1207 = vst [vmem:[#allocation2 + $0x40] sm:$0xff] %v1543_v52  ;;  %1552 = vpow2.f32 %v1242_v48 }
 0x38e   :  { %1209 = vst [vmem:[#allocation2 + $0x50] sm:$0xff] %v1545_v55  ;;  %1554 = vpow2.f32 %v1247_v53  ;;  %v1248_v56 = vmul.f32 -1.442695, %v1038_v54 }
 0x390   :  { %1556 = vpow2.f32 %v1248_v56 }
 0x397   :  { %v1547_v57 = vpop.eup %1546 }
 0x398   :  { %v1549_v58 = vpop.eup %1548  ;;  %v1161_v59 = vadd.f32 1.0, %v1547_v57 }
 0x399   :  { %v1551_v60 = vpop.eup %1550  ;;  %v1170_v61 = vadd.f32 1.0, %v1549_v58 }
 0x39a   :  { %v1553_v62 = vpop.eup %1552  ;;  %1558 = vrcp.f32 %v1161_v59  ;;  %v1162_v63 = vadd.f32 1.0, %v1551_v60 }
 0x39b   :  { %v1555_v0 = vpop.eup %1554  ;;  %1560 = vrcp.f32 %v1170_v61  ;;  %v1163_v1 = vadd.f32 1.0, %v1553_v62 }
 0x39c   :  { %1562 = vrcp.f32 %v1162_v63  ;;  %v1168_v2 = vadd.f32 1.0, %v1555_v0 }
 0x39d   :  { %v1557_v3 = vpop.eup %1556  ;;  %1564 = vrcp.f32 %v1163_v1 }
 0x39e   :  { %1566 = vrcp.f32 %v1168_v2  ;;  %v1169_v4 = vadd.f32 1.0, %v1557_v3 }
 0x3a0   :  { %1568 = vrcp.f32 %v1169_v4 }
 0x3a7   :  { %v1559_v5 = vpop.eup %1558 }
 0x3a8   :  { %v1561_v6 = vpop.eup %1560  ;;  %1203 = vst [vmem:[#allocation2 + $0x20] sm:$0xff] %v1559_v5 }
 0x3a9   :  { %v1563_v7 = vpop.eup %1562  ;;  %1212 = vst.msk [vmem:[#allocation2 + $0x68] sm:$0xff] %vm152_vm0, %v1561_v6 }
 0x3aa   :  { %v1565_v8 = vpop.eup %1564  ;;  %1204 = vst [vmem:[#allocation2 + $0x28] sm:$0xff] %v1563_v7 }
 0x3ab   :  { %v1567_v9 = vpop.eup %1566  ;;  %1205 = vst.msk [vmem:[#allocation2 + $0x30] sm:$0xff] %vm152_vm0, %v1565_v8 }
 0x3ac   :  { %1210 = vst [vmem:[#allocation2 + $0x58] sm:$0xff] %v1567_v9 }
 0x3ad   :  { %v1569_v10 = vpop.eup %1568 }
 0x3ae   :  { %1211 = vst [vmem:[#allocation2 + $0x60] sm:$0xff] %v1569_v10 }
 0x3af   :  { %1581 = shalt.err (!%p1578_p4)
}
 0x3b0   :  { %s1594_s13 = smov 896   ;;  %s1595_s14 = smov 56  }
 0x3b1   :  { %1224 = dma.vmem_to_hbm [thread:$0]  %s1219_s11, 1792, %s2454_s9, [#allocation3], %s1594_s13, %s1594_s13, %s1595_s14  }
 0x3b2   :  { %1590 = dma.done.wait [#allocation3], 1792  }
 0x3b3   :  { %1591 = vsyncadd [#allocation3], 4294965504 }
 0x3b4   :  { %1228 = vsyncpa [#allocation3], 1 }

</bundles_post_ra>
